<compile_context>
chip_gen: v7x
topology: tpu7x:2x2x1
jax: 0.10.0
libtpu: 0.0.40
codegen_flags: <defaults>
</compile_context>

<pallas_src>
import functools

import numpy as np
import jax
import jax.numpy as jnp
from jax.experimental import pallas as pl
from jax.experimental.pallas import tpu as pltpu

# ----------------------------------------------------------------------------
# constants (reference values; threshold kept small for the tiny synthetic run)
# ----------------------------------------------------------------------------
_HOUGHVOTING_DIRECTION_INLIER = 0.9
_HOUGHVOTING_NUM_INLIER = 500
_LABEL2MASK_THRESHOL = 100          # not defined in the reference snippet
NUM_CLASSES = 10
TARGET_H, TARGET_W = 48, 64         # scaled down from (480, 640)


# ----------------------------------------------------------------------------
# Pallas kernel 1: matmul with fused bias (+ optional ReLU, + optional softmax)
#   A:(M,K) bf16, W:(K,N) bf16, bias:(1,N) f32  ->  out:(M,N) f32
#   Full-K / full-N blocks (no k grid axis); M tiled only when large.
# ----------------------------------------------------------------------------
def _mm_kernel(a_ref, b_ref, bias_ref, o_ref, *, relu, softmax):
    acc = jnp.dot(a_ref[...], b_ref[...], preferred_element_type=jnp.float32)
    r = acc + bias_ref[...]
    if relu:
        r = jnp.maximum(r, 0.0)
    if softmax:
        m = jnp.max(r, axis=-1, keepdims=True)
        e = jnp.exp(r - m)
        denom = jnp.sum(e, axis=-1, keepdims=True)
        r = e * pl.reciprocal(denom, approx=True)
    o_ref[...] = r.astype(o_ref.dtype)


def _pick_tm(M):
    # Prefer >=2 M-blocks (v7x megacore) when M is big; otherwise one full block.
    for cand in (512, 256, 128):
        if M % cand == 0 and M // cand >= 2:
            return cand
    return M


def pallas_matmul(a, b, bias=None, relu=False, softmax=False):
    """out = epilogue(a @ b + bias). a:(M,K), b:(K,N), bias:(N,)."""
    M, K = a.shape
    _, N = b.shape
    a = a.astype(jnp.bfloat16)
    b = b.astype(jnp.bfloat16)
    if bias is None:
        bias = jnp.zeros((N,), jnp.float32)
    bias2d = jnp.asarray(bias, jnp.float32).reshape(1, N)

    tm = _pick_tm(M)
    grid = (M // tm,)

    out = pl.pallas_call(
        functools.partial(_mm_kernel, relu=relu, softmax=softmax),
        out_shape=jax.ShapeDtypeStruct((M, N), jnp.float32),
        grid_spec=pltpu.PrefetchScalarGridSpec(
            num_scalar_prefetch=0,
            grid=grid,
            in_specs=[
                pl.BlockSpec((tm, K), lambda i: (i, 0)),
                pl.BlockSpec((K, N), lambda i: (0, 0)),
                pl.BlockSpec((1, N), lambda i: (0, 0)),
            ],
            out_specs=pl.BlockSpec((tm, N), lambda i: (i, 0)),
        ),
        compiler_params=pltpu.CompilerParams(
            dimension_semantics=("parallel",)),
    )(a, b, bias2d)
    return out


# ----------------------------------------------------------------------------
# Pallas kernel 2: per-pixel argmax over the class axis, lane-dense output.
#   x: (B, C, P)  ->  (B, P) int32   (P = H*W, multiple of 128)
# ----------------------------------------------------------------------------
def _argmax_kernel(x_ref, o_ref):
    x = x_ref[...]                                        # (1, C, P)
    m = jnp.max(x, axis=1, keepdims=True)
    idx = jax.lax.broadcasted_iota(jnp.int32, x.shape, 1)
    cand = jnp.where(x >= m, idx, x.shape[1])
    o_ref[...] = jnp.min(cand, axis=1).astype(jnp.int32)  # (1, P)


def pallas_argmax_channels(x):
    """x: (B, C, P) float32 with P a multiple of 128 -> (B, P) int32 argmax."""
    B, C, P = x.shape
    return pl.pallas_call(
        _argmax_kernel,
        out_shape=jax.ShapeDtypeStruct((B, P), jnp.int32),
        grid_spec=pltpu.PrefetchScalarGridSpec(
            num_scalar_prefetch=0,
            grid=(B,),
            in_specs=[pl.BlockSpec((1, C, P), lambda i: (i, 0, 0))],
            out_specs=pl.BlockSpec((1, P), lambda i: (i, 0)),
        ),
        compiler_params=pltpu.CompilerParams(
            dimension_semantics=("parallel",)),
    )(x)


# ----------------------------------------------------------------------------
# conv / pool / resize glue (NHWC; convs use the Pallas matmul for the GEMM)
# ----------------------------------------------------------------------------
def conv2d_nhwc(x, w, b, relu=False, softmax=False):
    """x: (B,H,W,C) NHWC, w: (O,C,kh,kw) (PyTorch layout), stride 1, 'same'."""
    B, H, W, C = x.shape
    O, _, kh, kw = w.shape
    if kh == 1 and kw == 1:
        rows = x.reshape(B * H * W, C)
        wmat = w.reshape(O, C).T
    else:
        ph, pw = kh // 2, kw // 2
        # build im2col patches in bf16 (half the bytes) directly on NHWC data
        xp = jnp.pad(x.astype(jnp.bfloat16), ((0, 0), (ph, ph), (pw, pw), (0, 0)))
        cols = [xp[:, dy:dy + H, dx:dx + W, :]
                for dy in range(kh) for dx in range(kw)]
        rows = jnp.concatenate(cols, axis=-1).reshape(B * H * W, kh * kw * C)
        wmat = jnp.transpose(w, (2, 3, 1, 0)).reshape(kh * kw * C, O)
    out = pallas_matmul(rows, wmat, b, relu=relu, softmax=softmax)
    return out.reshape(B, H, W, O)


def maxpool2_nhwc(x):
    B, H, W, C = x.shape
    return x.reshape(B, H // 2, 2, W // 2, 2, C).max(axis=(2, 4))


def _interp_matrix(in_size, out_size, align_corners):
    """Dense (out_size, in_size) bilinear interpolation matrix (gather-free)."""
    if in_size == 1:
        return jnp.ones((out_size, 1), jnp.float32)
    if align_corners:
        src = jnp.arange(out_size, dtype=jnp.float32) * ((in_size - 1.0) / (out_size - 1.0))
    else:
        src = jnp.clip((jnp.arange(out_size, dtype=jnp.float32) + 0.5)
                       * (in_size / out_size) - 0.5, 0.0, in_size - 1.0)
    i0 = jnp.floor(src).astype(jnp.int32)
    i1 = jnp.minimum(i0 + 1, in_size - 1)
    w1 = src - i0
    w0 = 1.0 - w1
    rows = jnp.arange(out_size)
    M = jnp.zeros((out_size, in_size), jnp.float32)
    M = M.at[rows, i0].add(w0)
    M = M.at[rows, i1].add(w1)
    return M


def bilinear_resize_nhwc(x, out_h, out_w, align_corners):
    """x: (B,H,W,C) -> (B,out_h,out_w,C). Mirrors F.interpolate bilinear."""
    _, H, W, _ = x.shape
    Wy = _interp_matrix(H, out_h, align_corners)
    Wx = _interp_matrix(W, out_w, align_corners)
    x = jnp.einsum('oh,bhwc->bowc', Wy, x)
    x = jnp.einsum('pw,bowc->bopc', Wx, x)
    return x


# ----------------------------------------------------------------------------
# host-side, data-dependent pieces (no clean Pallas equivalent)
# ----------------------------------------------------------------------------
# TODO(synk): RoIPool, label2bbx, HoughVoting and pose assembly are
# data-dependent / dynamic-shape host logic; kept in numpy (the reference
# HoughVoting is itself numpy-based).
def roi_pool_np_nhwc(feat, rois, output_size, spatial_scale):
    B, H, W, C = feat.shape
    N = rois.shape[0]
    out = np.zeros((N, output_size, output_size, C), np.float32)
    for n in range(N):
        b = int(rois[n, 0])
        x1 = int(round(rois[n, 1] * spatial_scale))
        y1 = int(round(rois[n, 2] * spatial_scale))
        x2 = int(round(rois[n, 3] * spatial_scale))
        y2 = int(round(rois[n, 4] * spatial_scale))
        rw = max(x2 - x1 + 1, 1)
        rh = max(y2 - y1 + 1, 1)
        bw, bh = rw / output_size, rh / output_size
        for ph in range(output_size):
            for pw in range(output_size):
                hs = min(max(int(np.floor(ph * bh)) + y1, 0), H)
                he = min(max(int(np.ceil((ph + 1) * bh)) + y1, 0), H)
                ws = min(max(int(np.floor(pw * bw)) + x1, 0), W)
                we = min(max(int(np.ceil((pw + 1) * bw)) + x1, 0), W)
                if he > hs and we > ws:
                    out[n, ph, pw, :] = feat[b, hs:he, ws:we, :].max(axis=(0, 1))
    return out


def label2bbx_np(label, num_classes=NUM_CLASSES):
    bbx = []
    bs, H, W = label.shape
    for batch_id in range(bs):
        for cls_id in range(1, num_classes):     # reference skips cls_id 0
            ys, xs = np.where(label[batch_id] == cls_id)
            if ys.size >= _LABEL2MASK_THRESHOL:
                bbx.append([batch_id, xs.min(), ys.min(), xs.max(), ys.max(), cls_id])
    return np.array(bbx, dtype=np.float32).reshape(-1, 6)


def hough_voting_np(label, centermap, num_classes=NUM_CLASSES):
    batches, H, W = label.shape
    x = np.linspace(0, W - 1, W)
    y = np.linspace(0, H - 1, H)
    xv, yv = np.meshgrid(x, y)
    xy = np.array((xv, yv)).astype(np.float32)
    x_index = x.astype(np.int32)
    centers = np.zeros((batches, num_classes, 2), np.float32)
    depths = np.zeros((batches, num_classes), np.float32)
    with np.errstate(divide="ignore", invalid="ignore"):
        for bs in range(batches):
            for cls in range(1, num_classes + 1):
                cls_mask = label[bs] == cls
                if cls_mask.sum() >= _LABEL2MASK_THRESHOL:
                    pixel_location = xy[:2][:, cls_mask]
                    pixel_direction = centermap[bs, (cls - 1) * 3:cls * 3][:2][:, cls_mask]
                    y_index = x_index[None, :] - pixel_location[0][:, None]
                    y_index = np.round(
                        pixel_location[1][:, None]
                        + (pixel_direction[1] / pixel_direction[0])[:, None] * y_index)
                    mask = np.isfinite(y_index) & (y_index >= 0) & (y_index < H)
                    y_index = np.where(mask, y_index, 0).astype(np.int32)
                    count = y_index * W + x_index[None, :]
                    vals = count[mask]
                    if vals.size == 0:
                        continue
                    bc = np.bincount(vals)
                    center, inlier_num = bc.argmax(), bc.max()
                    center_x, center_y = center % W, center // W
                    if inlier_num > _HOUGHVOTING_NUM_INLIER:
                        centers[bs, cls - 1] = (center_x, center_y)
                        dis = xy - np.array([center_x, center_y], np.float32)[:, None, None]
                        direction = dis / np.sqrt((dis ** 2).sum(axis=0))[None]
                        pred_dir = centermap[bs, (cls - 1) * 3:cls * 3][:2]
                        # reproduces the reference operator-precedence behaviour
                        inlier_mask = (
                            (np.abs((direction * pred_dir).sum(axis=0))
                             >= _HOUGHVOTING_DIRECTION_INLIER).astype(label.dtype)
                            * label[bs]) == cls
                        if inlier_mask.any():
                            depths[bs, cls - 1] = centermap[
                                bs, (cls - 1) * 3:cls * 3][2, inlier_mask].mean()
    return centers, depths


def quaternion_to_matrix_np(q):
    r, i, j, k = q
    two_s = 2.0 / (q * q).sum()
    return np.array([
        [1 - two_s * (j * j + k * k), two_s * (i * j - k * r), two_s * (i * k + j * r)],
        [two_s * (i * j + k * r), 1 - two_s * (i * i + k * k), two_s * (j * k - i * r)],
        [two_s * (i * k - j * r), two_s * (j * k + i * r), 1 - two_s * (i * i + j * j)],
    ], dtype=np.float32)


def estimate_rotation_np(quaternion_map, filter_bbx):
    N = filter_bbx.shape[0]
    pred_Rs = np.zeros((N, 3, 3), np.float32)
    labels = []
    for idx in range(N):
        cls = int(filter_bbx[idx, 5])
        q = quaternion_map[idx, (cls - 1) * 4:cls * 4]
        q = q / max(np.linalg.norm(q), 1e-12)
        pred_Rs[idx] = quaternion_to_matrix_np(q)
        labels.append(cls)
    return pred_Rs, np.array(labels, np.int32)


def generate_pose_np(pred_Rs, pred_centers, pred_depths, bbxs, cam_intrinsic):
    output_dict = {}
    for idx in range(bbxs.shape[0]):
        bs, obj_id = int(bbxs[idx, 0]), int(bbxs[idx, 5])
        R = pred_Rs[idx]
        center = pred_centers[bs, obj_id - 1]
        depth = pred_depths[bs, obj_id - 1]
        if (center ** 2).sum() != 0:
            T = np.linalg.inv(cam_intrinsic) @ np.array([center[0], center[1], 1.0]) * depth
            T = T[:, np.newaxis]
            output_dict.setdefault(bs, {})[obj_id] = np.vstack(
                (np.hstack((R, T)), np.array([[0, 0, 0, 1.0]])))
    return output_dict


# ----------------------------------------------------------------------------
# parameter initialization (deterministic, kaiming-style)
# ----------------------------------------------------------------------------
def _conv_param(key, cin, cout, k, fan_mode="fan_in"):
    fan = cin * k * k if fan_mode == "fan_in" else cout * k * k
    w = jax.random.normal(key, (cout, cin, k, k), jnp.float32) * jnp.sqrt(2.0 / fan)
    return w, jnp.zeros((cout,), jnp.float32)


def _linear_param(key, cin, cout):
    # reference uses kaiming_normal_(mode='fan_out') -> std = sqrt(2/fan_out)
    w = jax.random.normal(key, (cout, cin), jnp.float32) * jnp.sqrt(2.0 / cout)
    return w, jnp.zeros((cout,), jnp.float32)


def build_params(key):
    params = {}
    # VGG16-style backbone, channels scaled by /8 (512 -> 64)
    cfg1 = [(3, 8), (8, 8), "M", (8, 16), (16, 16), "M",
            (16, 32), (32, 32), (32, 32), "M", (32, 64), (64, 64), (64, 64)]
    cfg2 = ["M", (64, 64), (64, 64), (64, 64)]
    feat_c = 64

    def make_stage(cfg, key):
        layers = []
        for item in cfg:
            if item == "M":
                layers.append("M")
            else:
                key, sub = jax.random.split(key)
                layers.append(_conv_param(sub, item[0], item[1], 3))
        return layers, key

    params["embedding1"], key = make_stage(cfg1, key)
    params["embedding2"], key = make_stage(cfg2, key)

    # segmentation branch (hidden 64, out num_classes+1)
    key, k1, k2, k3 = jax.random.split(key, 4)
    params["seg"] = {
        "convf1": _conv_param(k1, feat_c, 64, 1, "fan_out"),
        "convf2": _conv_param(k2, feat_c, 64, 1, "fan_out"),
        "res": _conv_param(k3, 64, NUM_CLASSES + 1, 1, "fan_out"),
    }
    # translation branch (hidden 128, out 3*num_classes)
    key, k1, k2, k3 = jax.random.split(key, 4)
    params["trans"] = {
        "convf1": _conv_param(k1, feat_c, 128, 1, "fan_out"),
        "convf2": _conv_param(k2, feat_c, 128, 1, "fan_out"),
        "res": _conv_param(k3, 128, 3 * NUM_CLASSES, 1, "fan_out"),
    }
    # rotation branch (roi 7x7, hidden scaled 4096 -> 256)
    roi, hidden = 7, 256
    key, k1, k2, k3 = jax.random.split(key, 4)
    params["rot"] = {
        "fc1": _linear_param(k1, roi * roi * feat_c, hidden),
        "fc2": _linear_param(k2, hidden, hidden),
        "fc3": _linear_param(k3, hidden, 4 * NUM_CLASSES),
        "roi_shape": roi,
    }
    return params


# ----------------------------------------------------------------------------
# PoseCNN (eval forward)
# ----------------------------------------------------------------------------
class PoseCNNPallas:
    def __init__(self, params, models_pcd, cam_intrinsic):
        self.params = params
        self.models_pcd = models_pcd
        self.cam_intrinsic = cam_intrinsic

    def _run_stage(self, x, layers):
        for item in layers:
            if item == "M":
                x = maxpool2_nhwc(x)
            else:
                w, b = item
                x = conv2d_nhwc(x, w, b, relu=True)
        return x

    def feature_extraction(self, rgb_nhwc):
        feat1 = self._run_stage(rgb_nhwc, self.params["embedding1"])   # (B,H/8, W/8, 64)
        feat2 = self._run_stage(feat1, self.params["embedding2"])      # (B,H/16,W/16,64)
        return feat1, feat2

    def heads(self, feat1, feat2):
        """Combined segmentation + translation heads (shared convf1/convf2 GEMMs)."""
        ps, pt = self.params["seg"], self.params["trans"]
        seg_hid = ps["convf1"][0].shape[0]           # 64
        # combined 1x1 convs (output channels concatenated: 64 + 128 = 192)
        w1 = jnp.concatenate([ps["convf1"][0], pt["convf1"][0]], axis=0)
        b1 = jnp.concatenate([ps["convf1"][1], pt["convf1"][1]], axis=0)
        w2 = jnp.concatenate([ps["convf2"][0], pt["convf2"][0]], axis=0)
        b2 = jnp.concatenate([ps["convf2"][1], pt["convf2"][1]], axis=0)

        f1 = conv2d_nhwc(feat1, w1, b1, relu=True)          # (B, h1, w1, 192)
        f2 = conv2d_nhwc(feat2, w2, b2, relu=True)          # (B, h2, w2, 192)
        f2_up = bilinear_resize_nhwc(f2, f1.shape[1], f1.shape[2], align_corners=False)
        f = f1 + f2_up

        # seg res-conv with the softmax fused into the matmul epilogue
        prob = conv2d_nhwc(f[..., :seg_hid], *ps["res"], relu=False, softmax=True)
        # trans res-conv
        trans = conv2d_nhwc(f[..., seg_hid:], *pt["res"], relu=False)
        return prob, trans                                   # NHWC

    def segmentation_outputs(self, prob_nhwc):
        prob_up = bilinear_resize_nhwc(prob_nhwc, TARGET_H, TARGET_W, align_corners=True)
        prob_nchw = jnp.transpose(prob_up, (0, 3, 1, 2))               # (B, 11, TH, TW)
        B, C, TH, TW = prob_nchw.shape
        seg = pallas_argmax_channels(prob_nchw.reshape(B, C, TH * TW)).reshape(B, TH, TW)
        bbx = label2bbx_np(np.asarray(jax.device_get(seg)))
        return prob_nchw, seg, bbx

    def translation_output(self, trans_nhwc):
        t_up = bilinear_resize_nhwc(trans_nhwc, TARGET_H, TARGET_W, align_corners=True)
        return jnp.transpose(t_up, (0, 3, 1, 2))                        # NCHW

    def rotation_branch(self, feat1_np, feat2_np, rois):
        p = self.params["rot"]
        roi = p["roi_shape"]
        r1 = roi_pool_np_nhwc(feat1_np, rois, roi, 1.0 / 8)
        r2 = roi_pool_np_nhwc(feat2_np, rois, roi, 1.0 / 16)
        feat = jnp.asarray((r1 + r2).reshape(rois.shape[0], -1))
        # reference RotationBranch.forward has no ReLU between fc layers
        x = pallas_matmul(feat, p["fc1"][0].T, p["fc1"][1])
        x = pallas_matmul(x, p["fc2"][0].T, p["fc2"][1])
        x = pallas_matmul(x, p["fc3"][0].T, p["fc3"][1])
        return x

    def forward(self, input_dict):
        rgb = input_dict["rgb"]                                  # NCHW
        rgb_nhwc = jnp.transpose(rgb, (0, 2, 3, 1))              # one relayout at entry
        feat1, feat2 = self.feature_extraction(rgb_nhwc)

        prob_nhwc, trans_nhwc = self.heads(feat1, feat2)
        probability, segmentation, bbx_pred = self.segmentation_outputs(prob_nhwc)
        translation_map = self.translation_output(trans_nhwc)

        seg_np = np.asarray(jax.device_get(segmentation))
        trans_np = np.asarray(jax.device_get(translation_map))
        pred_centers, pred_depths = hough_voting_np(seg_np, trans_np, NUM_CLASSES)

        output_dict = {}
        if bbx_pred.shape[0] > 0:
            feat1_np = np.asarray(jax.device_get(feat1))
            feat2_np = np.asarray(jax.device_get(feat2))
            quat = np.asarray(jax.device_get(
                self.rotation_branch(feat1_np, feat2_np, bbx_pred[:, :-1])))
            pred_rotation, _ = estimate_rotation_np(quat, bbx_pred)
            output_dict = generate_pose_np(pred_rotation, pred_centers, pred_depths,
                                           bbx_pred, self.cam_intrinsic)
        return output_dict, segmentation, probability, translation_map


# ----------------------------------------------------------------------------
# main
# ----------------------------------------------------------------------------
if __name__ == "__main__":
    key = jax.random.PRNGKey(0)
    key, pkey, xkey = jax.random.split(key, 3)
    params = build_params(pkey)

    # small synthetic input: batch=2, RGB, 32x32 (features at /8 = 4x4, /16 = 2x2)
    rgb = jax.random.normal(xkey, (2, 3, 32, 32), jnp.float32)

    cam_intrinsic = np.array([[100.0, 0.0, TARGET_W / 2],
                              [0.0, 100.0, TARGET_H / 2],
                              [0.0, 0.0, 1.0]], dtype=np.float32)
    models_pcd = np.zeros((NUM_CLASSES, 16, 3), np.float32)   # unused in eval path

    model = PoseCNNPallas(params, models_pcd, cam_intrinsic)
    output_dict, segmentation, probability, translation_map = model.forward({"rgb": rgb})

    jax.block_until_ready(segmentation)
    jax.block_until_ready(probability)
    jax.block_until_ready(translation_map)
    print("KERNEL_OK")
</pallas_src>

<mosaic_0001>
module attributes {stable_mosaic.version = 11 : i64} {
  func.func @_mm_kernel(%arg0: i32, %arg1: memref<512x27xbf16, #tpu.memory_space<vmem>>, %arg2: memref<27x8xbf16, #tpu.memory_space<vmem>>, %arg3: memref<1x8xf32, #tpu.memory_space<vmem>>, %arg4: memref<512x8xf32, #tpu.memory_space<vmem>>) attributes {dimension_semantics = [#tpu.dimension_semantics<parallel>], iteration_bounds = array<i64: 4>, scalar_prefetch = 0 : i64, scratch_operands = 0 : i64, tpu.core_type = #tpu.core_type<tc>, window_params = [{transform_indices = @transform_0, window_bounds = array<i64: 512, 27>}, {pipeline_mode = #tpu.pipeline_mode<synchronous>, transform_indices = @transform_1, window_bounds = array<i64: 27, 8>}, {pipeline_mode = #tpu.pipeline_mode<synchronous>, transform_indices = @transform_2, window_bounds = array<i64: 1, 8>}, {transform_indices = @transform_3, window_bounds = array<i64: 512, 8>}]} {
    %c0 = arith.constant 0 : index
    %c0_0 = arith.constant 0 : index
    %0 = vector.load %arg1[%c0, %c0_0] : memref<512x27xbf16, #tpu.memory_space<vmem>>, vector<512x27xbf16>
    %c0_1 = arith.constant 0 : index
    %c0_2 = arith.constant 0 : index
    %1 = vector.load %arg2[%c0_1, %c0_2] : memref<27x8xbf16, #tpu.memory_space<vmem>>, vector<27x8xbf16>
    %cst = arith.constant dense<0.000000e+00> : vector<512x8xf32>
    %2 = tpu.matmul %0, %1, %cst {dimension_numbers = #tpu.dot_dimension_numbers<[1], [0], [0], [1], [0, 0, 1, 1], [], []>} : vector<512x27xbf16>, vector<27x8xbf16>, vector<512x8xf32> -> vector<512x8xf32>
    %c0_3 = arith.constant 0 : index
    %c0_4 = arith.constant 0 : index
    %3 = vector.load %arg3[%c0_3, %c0_4] : memref<1x8xf32, #tpu.memory_space<vmem>>, vector<1x8xf32>
    %4 = vector.broadcast %3 : vector<1x8xf32> to vector<512x8xf32>
    %5 = arith.addf %2, %4 : vector<512x8xf32>
    %cst_5 = arith.constant 0.000000e+00 : f32
    %6 = vector.broadcast %cst_5 : f32 to vector<512x8xf32>
    %7 = arith.maximumf %5, %6 : vector<512x8xf32>
    %c0_6 = arith.constant 0 : index
    %c0_7 = arith.constant 0 : index
    %8 = vector.load %arg4[%c0_6, %c0_7] : memref<512x8xf32, #tpu.memory_space<vmem>>, vector<512x8xf32>
    tpu.vector_store %arg4[%c0_6, %c0_7], %7 {strides = array<i32>} : memref<512x8xf32, #tpu.memory_space<vmem>>, vector<512x8xf32>,
    return
  }
  func.func @transform_0(%arg0: i32) -> (i32, i32) {
    %c0_i32 = arith.constant 0 : i32
    %c0_i32_0 = arith.constant 0 : i32
    return %arg0, %c0_i32 : i32, i32
  }
  func.func @transform_1(%arg0: i32) -> (i32, i32) {
    %c0_i32 = arith.constant 0 : i32
    %c0_i32_0 = arith.constant 0 : i32
    %c0_i32_1 = arith.constant 0 : i32
    return %c0_i32, %c0_i32_0 : i32, i32
  }
  func.func @transform_2(%arg0: i32) -> (i32, i32) {
    %c0_i32 = arith.constant 0 : i32
    %c0_i32_0 = arith.constant 0 : i32
    %c0_i32_1 = arith.constant 0 : i32
    return %c0_i32, %c0_i32_0 : i32, i32
  }
  func.func @transform_3(%arg0: i32) -> (i32, i32) {
    %c0_i32 = arith.constant 0 : i32
    %c0_i32_0 = arith.constant 0 : i32
    return %arg0, %c0_i32 : i32, i32
  }
}

</mosaic_0001>

<bundles_post_ra>
// kernel: tpu_custom_call.1
= control target key start
LH: loop header
LB: loop body
LE: loop exit
PB: predicated region body
PF: predicated region fallthrough
CT: control target
= control target key end

     0   :  { %s1255_s12 = smov 0   ;;  %s1547_s0 = inlined_call_operand.vmem [shape: bf16[2048,27], index: 0, kind: input, shape index: {}]   ;;  %s1548_s1 = inlined_call_operand.vmem [shape: bf16[27,8], index: 1, kind: input, shape index: {}]   ;;  %s1549_s2 = inlined_call_operand.vmem [shape: f32[1,8], index: 2, kind: input, shape index: {}]   ;;  %s1550_s3 = inlined_call_operand.vmem [shape: f32[2048,8], index: 3, kind: output, shape index: {}]  }
   0x1 LB: > { %s999_s13 = sadd.s32 4294967295, %s1232_s12   ;;  %p1003_p0 = scmp.ge.s32.totalorder %s1232_s12, 1  ;;  %s1232_s12 = sphi %s1255_s12, %s13_s12  }
   0x2   : > { %p138_p1 = scmp.lt.s32.totalorder %s1232_s12, 5 }
   0x4   : > { %p139_p2 = pnand %p1003_p0, %p138_p1 }
   0x5   : > { %v1192_v0 = vld [vmem:[%s1548_s1] sm:$0xff] (!%p139_p2)   ;;  %vm518_vm0 = vcmask (!%p139_p2), 1044480   ;;  %v1193_v1 = vld [vmem:[%s1548_s1 + $0x8] sm:$0x3f] (!%p139_p2)   ;;  %vm519_vm1 = vcmask (!%p139_p2), 1045504   ;;  %s1004_s18 = sshll.u32 (!%p139_p2), %s999_s13, 6 }
   0x6   : > { %142 = sbr.rel (%p139_p2) target bundleno = 295 (0x127), region = 32  ;;  %1111 = vmatprep.subr.bf16.mxu0 (!%p139_p2), %v1192_v0  ;;  %1179 = vmatprep.subr.bf16.mxu1 (!%p139_p2), %v1192_v0  ;;  %v1234_v2 = vmov (!%p139_p2), 65535   ;;  %p163_p3 = scmp.lt.s32.totalorder (!%p139_p2), %s1004_s18, 255  ;;  %vm421_vm2 = vcmask (!%p139_p2), 220160   ;;  %v1344_v38 = vld [vmem:[%s1549_s2] ss:$0 sm:$0xff] (!%p139_p2) }
   0x7   : > { %1112 = vmatpush3.bf16.msra.mxu0 (!%p139_p2), %v1192_v0  ;;  %1181 = vmatpush3.bf16.msra.mxu1 (!%p139_p2), %v1192_v0  ;;  %v520_v3 = vsel (!%p139_p2), %vm518_vm0, 4294967295, %v1234_v2  ;;  %vm878_vm3 = vcmask (!%p139_p2), 64512  }
   0x8   : > { %v521_v4 = vsel (!%p139_p2), %vm519_vm1, %v520_v3, 0 }
   0x9   : > { %v523_v5 = vand.u32 (!%p139_p2), %v1193_v1, %v521_v4 }
   0xb   : > { %1113 = vmatprep.subr.bf16.mxu0 (!%p139_p2), %v523_v5  ;;  %1180 = vmatprep.subr.bf16.mxu1 (!%p139_p2), %v523_v5 }
   0xc   : > { %1114 = vmatpush3.bf16.msra.mxu0 (!%p139_p2), %v523_v5  ;;  %1182 = vmatpush3.bf16.msra.mxu1 (!%p139_p2), %v523_v5 }
   0xd   : > { %s1552_s18 = smov (!%p163_p3, %s1004_s18), 255 }
   0xe   : > { %s1005_s19 = sshll.u32 %s1552_s18, 2  ;;  %s1007_s25 = sshll.u32 %s1552_s18, 3 }
   0xf   : > { %s1275_s22 = scalar_lea.vmem %s1547_s0, %s1005_s19  ;;  %s1351_s28 = scalar_lea.vmem %s1550_s3, %s1007_s25 }
  0x10   : > { %v1194_v6 = vld [vmem:[%s1275_s22] sm:$0xff]   ;;  %v1196_v8 = vld [vmem:[%s1275_s22 + $0x8] sm:$0xff]   ;;  %v1198_v10 = vld [vmem:[%s1275_s22 + $0x10] sm:$0xff]  }
  0x11   : > { %v1195_v7 = vld [vmem:[%s1275_s22 + $0x80] sm:$0xff]   ;;  %1115 = vmatprep.mubr.msk.bf16.mxu0 %vm421_vm2, %v1194_v6  ;;  %v1197_v9 = vld [vmem:[%s1275_s22 + $0x88] sm:$0xff]   ;;  %v1199_v11 = vld [vmem:[%s1275_s22 + $0x90] sm:$0xff]  }
  0x12   : > { %1147 = vmatprep.mubr.msk.bf16.mxu1 %vm421_vm2, %v1195_v7  ;;  %1116 = vmatmul.mubr.msk.bf16.vlgmr.msra.gmra.mrb[0].mxu0 %vm421_vm2, %v1196_v8  ;;  %v1200_v12 = vld [vmem:[%s1275_s22 + $0x18] sm:$0xff]   ;;  %v1202_v14 = vld [vmem:[%s1275_s22 + $0x20] sm:$0xff]   ;;  %v1204_v16 = vld [vmem:[%s1275_s22 + $0x28] sm:$0xff]  }
  0x13   : > { %1148 = vmatmul.mubr.msk.bf16.vlgmr.msra.gmra.mrb[0].mxu1 %vm421_vm2, %v1197_v9  ;;  %1119 = vmatprep.mubr.msk.bf16.mxu0 %vm421_vm2, %v1198_v10  ;;  %v1201_v13 = vld [vmem:[%s1275_s22 + $0x98] sm:$0xff]   ;;  %v1203_v15 = vld [vmem:[%s1275_s22 + $0xa0] sm:$0xff]   ;;  %v1205_v17 = vld [vmem:[%s1275_s22 + $0xa8] sm:$0xff]  }
  0x14   : > { %1151 = vmatprep.mubr.msk.bf16.mxu1 %vm421_vm2, %v1199_v11  ;;  %v1206_v18 = vld [vmem:[%s1275_s22 + $0x30] sm:$0xff]   ;;  %v1208_v20 = vld [vmem:[%s1275_s22 + $0x38] sm:$0xff]   ;;  %v1210_v22 = vld [vmem:[%s1275_s22 + $0x40] sm:$0xff]  }
  0x15   : > { %v1207_v19 = vld [vmem:[%s1275_s22 + $0xb0] sm:$0xff]   ;;  %v1209_v21 = vld [vmem:[%s1275_s22 + $0xb8] sm:$0xff]   ;;  %v1211_v23 = vld [vmem:[%s1275_s22 + $0xc0] sm:$0xff]  }
  0x16   : > { %v1212_v24 = vld [vmem:[%s1275_s22 + $0x48] sm:$0xff]   ;;  %v1214_v26 = vld [vmem:[%s1275_s22 + $0x50] sm:$0xff]   ;;  %v1216_v28 = vld [vmem:[%s1275_s22 + $0x58] sm:$0xff]  }
  0x17   : > { %v1213_v25 = vld [vmem:[%s1275_s22 + $0xc8] sm:$0xff]   ;;  %v1215_v27 = vld [vmem:[%s1275_s22 + $0xd0] sm:$0xff]   ;;  %v1217_v29 = vld [vmem:[%s1275_s22 + $0xd8] sm:$0xff]  }
  0x18   : > { %v1218_v30 = vld [vmem:[%s1275_s22 + $0x60] sm:$0xff]   ;;  %v1220_v32 = vld [vmem:[%s1275_s22 + $0x68] sm:$0xff]   ;;  %v1222_v34 = vld [vmem:[%s1275_s22 + $0x70] sm:$0xff]  }
  0x19   : > { %v1219_v31 = vld [vmem:[%s1275_s22 + $0xe0] sm:$0xff]   ;;  %v1221_v33 = vld [vmem:[%s1275_s22 + $0xe8] sm:$0xff]   ;;  %v1223_v35 = vld [vmem:[%s1275_s22 + $0xf0] sm:$0xff]  }
  0x1a   : > { %1120 = vmatmul.mubr.msk.bf16.gmra.mrb[4].mxu0 %vm421_vm2, %v1200_v12  ;;  %v1224_v36 = vld [vmem:[%s1275_s22 + $0x78] sm:$0xff]  }
  0x1b   : > { %1152 = vmatmul.mubr.msk.bf16.gmra.mrb[4].mxu1 %vm421_vm2, %v1201_v13  ;;  %1123 = vmatprep.mubr.msk.bf16.mxu0 %vm421_vm2, %v1202_v14  ;;  %v1225_v37 = vld [vmem:[%s1275_s22 + $0xf8] sm:$0xff]  }
  0x1c   : > { %1155 = vmatprep.mubr.msk.bf16.mxu1 %vm421_vm2, %v1203_v15 }
  0x22   : > { %1124 = vmatmul.mubr.msk.bf16.gmra.mrb[8].mxu0 %vm421_vm2, %v1204_v16 }
  0x23   : > { %1156 = vmatmul.mubr.msk.bf16.gmra.mrb[8].mxu1 %vm421_vm2, %v1205_v17  ;;  %1127 = vmatprep.mubr.msk.bf16.mxu0 %vm421_vm2, %v1206_v18 }
  0x24   : > { %1159 = vmatprep.mubr.msk.bf16.mxu1 %vm421_vm2, %v1207_v19 }
  0x2a   : > { %1128 = vmatmul.mubr.msk.bf16.gmra.mrb[12].mxu0 %vm421_vm2, %v1208_v20 }
  0x2b   : > { %1160 = vmatmul.mubr.msk.bf16.gmra.mrb[12].mxu1 %vm421_vm2, %v1209_v21  ;;  %1131 = vmatprep.mubr.msk.bf16.mxu0 %vm421_vm2, %v1210_v22 }
  0x2c   : > { %1163 = vmatprep.mubr.msk.bf16.mxu1 %vm421_vm2, %v1211_v23 }
  0x32   : > { %1132 = vmatmul.mubr.msk.bf16.gmra.mrb[16].mxu0 %vm421_vm2, %v1212_v24 }
  0x33   : > { %1164 = vmatmul.mubr.msk.bf16.gmra.mrb[16].mxu1 %vm421_vm2, %v1213_v25  ;;  %1135 = vmatprep.mubr.msk.bf16.mxu0 %vm421_vm2, %v1214_v26 }
  0x34   : > { %1167 = vmatprep.mubr.msk.bf16.mxu1 %vm421_vm2, %v1215_v27 }
  0x3a   : > { %1136 = vmatmul.mubr.msk.bf16.gmra.mrb[20].mxu0 %vm421_vm2, %v1216_v28 }
  0x3b   : > { %1168 = vmatmul.mubr.msk.bf16.gmra.mrb[20].mxu1 %vm421_vm2, %v1217_v29  ;;  %1139 = vmatprep.mubr.msk.bf16.mxu0 %vm421_vm2, %v1218_v30 }
  0x3c   : > { %1171 = vmatprep.mubr.msk.bf16.mxu1 %vm421_vm2, %v1219_v31 }
  0x42   : > { %1140 = vmatmul.mubr.msk.bf16.gmra.mrb[24].mxu0 %vm421_vm2, %v1220_v32 }
  0x43   : > { %1172 = vmatmul.mubr.msk.bf16.gmra.mrb[24].mxu1 %vm421_vm2, %v1221_v33  ;;  %1143 = vmatprep.mubr.msk.bf16.mxu0 %vm421_vm2, %v1222_v34 }
  0x44   : > { %1175 = vmatprep.mubr.msk.bf16.mxu1 %vm421_vm2, %v1223_v35 }
  0x4a   : > { %1144 = vmatmul.mubr.msk.bf16.gmra.mrb[28].mxu0 %vm421_vm2, %v1224_v36 }
  0x4b   : > { %1176 = vmatmul.mubr.msk.bf16.gmra.mrb[28].mxu1 %vm421_vm2, %v1225_v37 }
  0xe5   : > { %v1117_v39 = vpop.f32.mrb[0].mxu0 }
  0xe6   : > { %v568_v40 = vadd.f32 %v1117_v39, %v1344_v38  ;;  %v1149_v41 = vpop.f32.mrb[0].mxu1  ;;  %v559_v42 = vpop.f32.mrb[1].mxu0 }
  0xe7   : > { %v696_v43 = vadd.f32 %v1149_v41, %v1344_v38  ;;  %v560_v44 = vadd.f32 %v1344_v38, %v559_v42  ;;  %v687_v45 = vpop.f32.mrb[1].mxu1  ;;  %v1118_v46 = vpop.f32.mrb[2].mxu0 }
  0xe8   : > { %v816_v47 = vmax.f32 %v568_v40, 0.0  ;;  %v688_v48 = vadd.f32 %v1344_v38, %v687_v45  ;;  %v571_v49 = vadd.f32 %v1118_v46, %v1344_v38  ;;  %v1150_v50 = vpop.f32.mrb[2].mxu1  ;;  %v562_v51 = vpop.f32.mrb[3].mxu0 }
  0xe9   : > { %v848_v52 = vmax.f32 %v696_v43, 0.0  ;;  %v814_v53 = vmax.f32 %v560_v44, 0.0  ;;  %v699_v54 = vadd.f32 %v1150_v50, %v1344_v38  ;;  %v563_v55 = vadd.f32 %v1344_v38, %v562_v51  ;;  %v690_v56 = vpop.f32.mrb[3].mxu1 }
  0xea   : > { %881 = vst.msk [vmem:[%s1351_s28 + $0x10] sm:$0xff] %vm878_vm3, %v816_v47  ;;  %v846_v57 = vmax.f32 %v688_v48, 0.0  ;;  %v817_v58 = vmax.f32 %v571_v49, 0.0  ;;  %v691_v59 = vadd.f32 %v1344_v38, %v690_v56 }
  0xeb   : > { %913 = vst.msk [vmem:[%s1351_s28 + $0x110] sm:$0xff] %vm878_vm3, %v848_v52  ;;  %879 = vst.msk [vmem:[%s1351_s28] sm:$0xff] %vm878_vm3, %v814_v53  ;;  %v849_v60 = vmax.f32 %v699_v54, 0.0  ;;  %v815_v61 = vmax.f32 %v563_v55, 0.0 }
  0xec   : > { %911 = vst.msk [vmem:[%s1351_s28 + $0x100] sm:$0xff] %vm878_vm3, %v846_v57  ;;  %882 = vst.msk [vmem:[%s1351_s28 + $0x18] sm:$0xff] %vm878_vm3, %v817_v58  ;;  %v847_v62 = vmax.f32 %v691_v59, 0.0 }
  0xed   : > { %914 = vst.msk [vmem:[%s1351_s28 + $0x118] sm:$0xff] %vm878_vm3, %v849_v60  ;;  %880 = vst.msk [vmem:[%s1351_s28 + $0x8] sm:$0xff] %vm878_vm3, %v815_v61  ;;  %v1121_v63 = vpop.f32.mrb[4].mxu0 }
  0xee   : > { %912 = vst.msk [vmem:[%s1351_s28 + $0x108] sm:$0xff] %vm878_vm3, %v847_v62  ;;  %v584_v0 = vadd.f32 %v1121_v63, %v1344_v38  ;;  %v1153_v1 = vpop.f32.mrb[4].mxu1  ;;  %v575_v2 = vpop.f32.mrb[5].mxu0 }
  0xef   : > { %v712_v3 = vadd.f32 %v1153_v1, %v1344_v38  ;;  %v576_v4 = vadd.f32 %v1344_v38, %v575_v2  ;;  %v703_v5 = vpop.f32.mrb[5].mxu1  ;;  %v1122_v6 = vpop.f32.mrb[6].mxu0 }
  0xf0   : > { %v820_v7 = vmax.f32 %v584_v0, 0.0  ;;  %v704_v8 = vadd.f32 %v1344_v38, %v703_v5  ;;  %v587_v9 = vadd.f32 %v1122_v6, %v1344_v38  ;;  %v1154_v10 = vpop.f32.mrb[6].mxu1  ;;  %v578_v11 = vpop.f32.mrb[7].mxu0 }
  0xf1   : > { %v852_v12 = vmax.f32 %v712_v3, 0.0  ;;  %v818_v13 = vmax.f32 %v576_v4, 0.0  ;;  %v715_v14 = vadd.f32 %v1154_v10, %v1344_v38  ;;  %v579_v15 = vadd.f32 %v1344_v38, %v578_v11  ;;  %v706_v16 = vpop.f32.mrb[7].mxu1 }
  0xf2   : > { %885 = vst.msk [vmem:[%s1351_s28 + $0x30] sm:$0xff] %vm878_vm3, %v820_v7  ;;  %v850_v17 = vmax.f32 %v704_v8, 0.0  ;;  %v821_v18 = vmax.f32 %v587_v9, 0.0  ;;  %v707_v19 = vadd.f32 %v1344_v38, %v706_v16 }
  0xf3   : > { %917 = vst.msk [vmem:[%s1351_s28 + $0x130] sm:$0xff] %vm878_vm3, %v852_v12  ;;  %883 = vst.msk [vmem:[%s1351_s28 + $0x20] sm:$0xff] %vm878_vm3, %v818_v13  ;;  %v853_v20 = vmax.f32 %v715_v14, 0.0  ;;  %v819_v21 = vmax.f32 %v579_v15, 0.0 }
  0xf4   : > { %915 = vst.msk [vmem:[%s1351_s28 + $0x120] sm:$0xff] %vm878_vm3, %v850_v17  ;;  %886 = vst.msk [vmem:[%s1351_s28 + $0x38] sm:$0xff] %vm878_vm3, %v821_v18  ;;  %v851_v22 = vmax.f32 %v707_v19, 0.0 }
  0xf5   : > { %918 = vst.msk [vmem:[%s1351_s28 + $0x138] sm:$0xff] %vm878_vm3, %v853_v20  ;;  %884 = vst.msk [vmem:[%s1351_s28 + $0x28] sm:$0xff] %vm878_vm3, %v819_v21  ;;  %v1125_v23 = vpop.f32.mrb[8].mxu0 }
  0xf6   : > { %916 = vst.msk [vmem:[%s1351_s28 + $0x128] sm:$0xff] %vm878_vm3, %v851_v22  ;;  %v600_v24 = vadd.f32 %v1125_v23, %v1344_v38  ;;  %v1157_v25 = vpop.f32.mrb[8].mxu1  ;;  %v591_v26 = vpop.f32.mrb[9].mxu0 }
  0xf7   : > { %v728_v27 = vadd.f32 %v1157_v25, %v1344_v38  ;;  %v592_v28 = vadd.f32 %v1344_v38, %v591_v26  ;;  %v719_v29 = vpop.f32.mrb[9].mxu1  ;;  %v1126_v30 = vpop.f32.mrb[10].mxu0 }
  0xf8   : > { %v824_v31 = vmax.f32 %v600_v24, 0.0  ;;  %v720_v32 = vadd.f32 %v1344_v38, %v719_v29  ;;  %v603_v33 = vadd.f32 %v1126_v30, %v1344_v38  ;;  %v1158_v34 = vpop.f32.mrb[10].mxu1  ;;  %v594_v35 = vpop.f32.mrb[11].mxu0 }
  0xf9   : > { %v856_v36 = vmax.f32 %v728_v27, 0.0  ;;  %v822_v37 = vmax.f32 %v592_v28, 0.0  ;;  %v731_v39 = vadd.f32 %v1158_v34, %v1344_v38  ;;  %v595_v40 = vadd.f32 %v1344_v38, %v594_v35  ;;  %v722_v41 = vpop.f32.mrb[11].mxu1 }
  0xfa   : > { %889 = vst.msk [vmem:[%s1351_s28 + $0x50] sm:$0xff] %vm878_vm3, %v824_v31  ;;  %v854_v42 = vmax.f32 %v720_v32, 0.0  ;;  %v825_v43 = vmax.f32 %v603_v33, 0.0  ;;  %v723_v44 = vadd.f32 %v1344_v38, %v722_v41 }
  0xfb   : > { %921 = vst.msk [vmem:[%s1351_s28 + $0x150] sm:$0xff] %vm878_vm3, %v856_v36  ;;  %887 = vst.msk [vmem:[%s1351_s28 + $0x40] sm:$0xff] %vm878_vm3, %v822_v37  ;;  %v857_v45 = vmax.f32 %v731_v39, 0.0  ;;  %v823_v46 = vmax.f32 %v595_v40, 0.0 }
  0xfc   : > { %919 = vst.msk [vmem:[%s1351_s28 + $0x140] sm:$0xff] %vm878_vm3, %v854_v42  ;;  %890 = vst.msk [vmem:[%s1351_s28 + $0x58] sm:$0xff] %vm878_vm3, %v825_v43  ;;  %v855_v47 = vmax.f32 %v723_v44, 0.0 }
  0xfd   : > { %922 = vst.msk [vmem:[%s1351_s28 + $0x158] sm:$0xff] %vm878_vm3, %v857_v45  ;;  %888 = vst.msk [vmem:[%s1351_s28 + $0x48] sm:$0xff] %vm878_vm3, %v823_v46  ;;  %v1129_v48 = vpop.f32.mrb[12].mxu0 }
  0xfe   : > { %920 = vst.msk [vmem:[%s1351_s28 + $0x148] sm:$0xff] %vm878_vm3, %v855_v47  ;;  %v616_v49 = vadd.f32 %v1129_v48, %v1344_v38  ;;  %v1161_v50 = vpop.f32.mrb[12].mxu1  ;;  %v607_v51 = vpop.f32.mrb[13].mxu0 }
  0xff   : > { %v744_v52 = vadd.f32 %v1161_v50, %v1344_v38  ;;  %v608_v53 = vadd.f32 %v1344_v38, %v607_v51  ;;  %v735_v54 = vpop.f32.mrb[13].mxu1  ;;  %v1130_v55 = vpop.f32.mrb[14].mxu0 }
 0x100   : > { %v828_v56 = vmax.f32 %v616_v49, 0.0  ;;  %v736_v57 = vadd.f32 %v1344_v38, %v735_v54  ;;  %v619_v58 = vadd.f32 %v1130_v55, %v1344_v38  ;;  %v1162_v59 = vpop.f32.mrb[14].mxu1  ;;  %v610_v60 = vpop.f32.mrb[15].mxu0 }
 0x101   : > { %v860_v61 = vmax.f32 %v744_v52, 0.0  ;;  %v826_v62 = vmax.f32 %v608_v53, 0.0  ;;  %v747_v63 = vadd.f32 %v1162_v59, %v1344_v38  ;;  %v611_v0 = vadd.f32 %v1344_v38, %v610_v60  ;;  %v738_v1 = vpop.f32.mrb[15].mxu1 }
 0x102   : > { %893 = vst.msk [vmem:[%s1351_s28 + $0x70] sm:$0xff] %vm878_vm3, %v828_v56  ;;  %v858_v2 = vmax.f32 %v736_v57, 0.0  ;;  %v829_v3 = vmax.f32 %v619_v58, 0.0  ;;  %v739_v4 = vadd.f32 %v1344_v38, %v738_v1 }
 0x103   : > { %925 = vst.msk [vmem:[%s1351_s28 + $0x170] sm:$0xff] %vm878_vm3, %v860_v61  ;;  %891 = vst.msk [vmem:[%s1351_s28 + $0x60] sm:$0xff] %vm878_vm3, %v826_v62  ;;  %v861_v5 = vmax.f32 %v747_v63, 0.0  ;;  %v827_v6 = vmax.f32 %v611_v0, 0.0 }
 0x104   : > { %923 = vst.msk [vmem:[%s1351_s28 + $0x160] sm:$0xff] %vm878_vm3, %v858_v2  ;;  %894 = vst.msk [vmem:[%s1351_s28 + $0x78] sm:$0xff] %vm878_vm3, %v829_v3  ;;  %v859_v7 = vmax.f32 %v739_v4, 0.0 }
 0x105   : > { %926 = vst.msk [vmem:[%s1351_s28 + $0x178] sm:$0xff] %vm878_vm3, %v861_v5  ;;  %892 = vst.msk [vmem:[%s1351_s28 + $0x68] sm:$0xff] %vm878_vm3, %v827_v6  ;;  %v1133_v8 = vpop.f32.mrb[16].mxu0 }
 0x106   : > { %924 = vst.msk [vmem:[%s1351_s28 + $0x168] sm:$0xff] %vm878_vm3, %v859_v7  ;;  %v632_v9 = vadd.f32 %v1133_v8, %v1344_v38  ;;  %v1165_v10 = vpop.f32.mrb[16].mxu1  ;;  %v623_v11 = vpop.f32.mrb[17].mxu0 }
 0x107   : > { %v760_v12 = vadd.f32 %v1165_v10, %v1344_v38  ;;  %v624_v13 = vadd.f32 %v1344_v38, %v623_v11  ;;  %v751_v14 = vpop.f32.mrb[17].mxu1  ;;  %v1134_v15 = vpop.f32.mrb[18].mxu0 }
 0x108   : > { %v832_v16 = vmax.f32 %v632_v9, 0.0  ;;  %v752_v17 = vadd.f32 %v1344_v38, %v751_v14  ;;  %v635_v18 = vadd.f32 %v1134_v15, %v1344_v38  ;;  %v1166_v19 = vpop.f32.mrb[18].mxu1  ;;  %v626_v20 = vpop.f32.mrb[19].mxu0 }
 0x109   : > { %v864_v21 = vmax.f32 %v760_v12, 0.0  ;;  %v830_v22 = vmax.f32 %v624_v13, 0.0  ;;  %v763_v23 = vadd.f32 %v1166_v19, %v1344_v38  ;;  %v627_v24 = vadd.f32 %v1344_v38, %v626_v20  ;;  %v754_v25 = vpop.f32.mrb[19].mxu1 }
 0x10a   : > { %897 = vst.msk [vmem:[%s1351_s28 + $0x90] sm:$0xff] %vm878_vm3, %v832_v16  ;;  %v862_v26 = vmax.f32 %v752_v17, 0.0  ;;  %v833_v27 = vmax.f32 %v635_v18, 0.0  ;;  %v755_v28 = vadd.f32 %v1344_v38, %v754_v25 }
 0x10b   : > { %929 = vst.msk [vmem:[%s1351_s28 + $0x190] sm:$0xff] %vm878_vm3, %v864_v21  ;;  %895 = vst.msk [vmem:[%s1351_s28 + $0x80] sm:$0xff] %vm878_vm3, %v830_v22  ;;  %v865_v29 = vmax.f32 %v763_v23, 0.0  ;;  %v831_v30 = vmax.f32 %v627_v24, 0.0 }
 0x10c   : > { %927 = vst.msk [vmem:[%s1351_s28 + $0x180] sm:$0xff] %vm878_vm3, %v862_v26  ;;  %898 = vst.msk [vmem:[%s1351_s28 + $0x98] sm:$0xff] %vm878_vm3, %v833_v27  ;;  %v863_v31 = vmax.f32 %v755_v28, 0.0 }
 0x10d   : > { %930 = vst.msk [vmem:[%s1351_s28 + $0x198] sm:$0xff] %vm878_vm3, %v865_v29  ;;  %896 = vst.msk [vmem:[%s1351_s28 + $0x88] sm:$0xff] %vm878_vm3, %v831_v30  ;;  %v1137_v32 = vpop.f32.mrb[20].mxu0 }
 0x10e   : > { %928 = vst.msk [vmem:[%s1351_s28 + $0x188] sm:$0xff] %vm878_vm3, %v863_v31  ;;  %v648_v33 = vadd.f32 %v1137_v32, %v1344_v38  ;;  %v1169_v34 = vpop.f32.mrb[20].mxu1  ;;  %v639_v35 = vpop.f32.mrb[21].mxu0 }
 0x10f   : > { %v776_v36 = vadd.f32 %v1169_v34, %v1344_v38  ;;  %v640_v37 = vadd.f32 %v1344_v38, %v639_v35  ;;  %v767_v39 = vpop.f32.mrb[21].mxu1  ;;  %v1138_v40 = vpop.f32.mrb[22].mxu0 }
 0x110   : > { %v836_v41 = vmax.f32 %v648_v33, 0.0  ;;  %v768_v42 = vadd.f32 %v1344_v38, %v767_v39  ;;  %v651_v43 = vadd.f32 %v1138_v40, %v1344_v38  ;;  %v1170_v44 = vpop.f32.mrb[22].mxu1  ;;  %v642_v45 = vpop.f32.mrb[23].mxu0 }
 0x111   : > { %v868_v46 = vmax.f32 %v776_v36, 0.0  ;;  %v834_v47 = vmax.f32 %v640_v37, 0.0  ;;  %v779_v48 = vadd.f32 %v1170_v44, %v1344_v38  ;;  %v643_v49 = vadd.f32 %v1344_v38, %v642_v45  ;;  %v770_v50 = vpop.f32.mrb[23].mxu1 }
 0x112   : > { %901 = vst.msk [vmem:[%s1351_s28 + $0xb0] sm:$0xff] %vm878_vm3, %v836_v41  ;;  %v866_v51 = vmax.f32 %v768_v42, 0.0  ;;  %v837_v52 = vmax.f32 %v651_v43, 0.0  ;;  %v771_v53 = vadd.f32 %v1344_v38, %v770_v50 }
 0x113   : > { %933 = vst.msk [vmem:[%s1351_s28 + $0x1b0] sm:$0xff] %vm878_vm3, %v868_v46  ;;  %899 = vst.msk [vmem:[%s1351_s28 + $0xa0] sm:$0xff] %vm878_vm3, %v834_v47  ;;  %v869_v54 = vmax.f32 %v779_v48, 0.0  ;;  %v835_v55 = vmax.f32 %v643_v49, 0.0 }
 0x114   : > { %931 = vst.msk [vmem:[%s1351_s28 + $0x1a0] sm:$0xff] %vm878_vm3, %v866_v51  ;;  %902 = vst.msk [vmem:[%s1351_s28 + $0xb8] sm:$0xff] %vm878_vm3, %v837_v52  ;;  %v867_v56 = vmax.f32 %v771_v53, 0.0 }
 0x115   : > { %934 = vst.msk [vmem:[%s1351_s28 + $0x1b8] sm:$0xff] %vm878_vm3, %v869_v54  ;;  %900 = vst.msk [vmem:[%s1351_s28 + $0xa8] sm:$0xff] %vm878_vm3, %v835_v55  ;;  %v1141_v57 = vpop.f32.mrb[24].mxu0 }
 0x116   : > { %932 = vst.msk [vmem:[%s1351_s28 + $0x1a8] sm:$0xff] %vm878_vm3, %v867_v56  ;;  %v664_v58 = vadd.f32 %v1141_v57, %v1344_v38  ;;  %v1173_v59 = vpop.f32.mrb[24].mxu1  ;;  %v655_v60 = vpop.f32.mrb[25].mxu0 }
 0x117   : > { %v792_v61 = vadd.f32 %v1173_v59, %v1344_v38  ;;  %v656_v62 = vadd.f32 %v1344_v38, %v655_v60  ;;  %v783_v63 = vpop.f32.mrb[25].mxu1  ;;  %v1142_v0 = vpop.f32.mrb[26].mxu0 }
 0x118   : > { %v840_v1 = vmax.f32 %v664_v58, 0.0  ;;  %v784_v2 = vadd.f32 %v1344_v38, %v783_v63  ;;  %v667_v3 = vadd.f32 %v1142_v0, %v1344_v38  ;;  %v1174_v4 = vpop.f32.mrb[26].mxu1  ;;  %v658_v5 = vpop.f32.mrb[27].mxu0 }
 0x119   : > { %v872_v6 = vmax.f32 %v792_v61, 0.0  ;;  %v838_v7 = vmax.f32 %v656_v62, 0.0  ;;  %v795_v8 = vadd.f32 %v1174_v4, %v1344_v38  ;;  %v659_v9 = vadd.f32 %v1344_v38, %v658_v5  ;;  %v786_v10 = vpop.f32.mrb[27].mxu1 }
 0x11a   : > { %905 = vst.msk [vmem:[%s1351_s28 + $0xd0] sm:$0xff] %vm878_vm3, %v840_v1  ;;  %v870_v11 = vmax.f32 %v784_v2, 0.0  ;;  %v841_v12 = vmax.f32 %v667_v3, 0.0  ;;  %v787_v13 = vadd.f32 %v1344_v38, %v786_v10 }
 0x11b   : > { %937 = vst.msk [vmem:[%s1351_s28 + $0x1d0] sm:$0xff] %vm878_vm3, %v872_v6  ;;  %903 = vst.msk [vmem:[%s1351_s28 + $0xc0] sm:$0xff] %vm878_vm3, %v838_v7  ;;  %v873_v14 = vmax.f32 %v795_v8, 0.0  ;;  %v839_v15 = vmax.f32 %v659_v9, 0.0 }
 0x11c   : > { %935 = vst.msk [vmem:[%s1351_s28 + $0x1c0] sm:$0xff] %vm878_vm3, %v870_v11  ;;  %906 = vst.msk [vmem:[%s1351_s28 + $0xd8] sm:$0xff] %vm878_vm3, %v841_v12  ;;  %v871_v16 = vmax.f32 %v787_v13, 0.0 }
 0x11d   : > { %938 = vst.msk [vmem:[%s1351_s28 + $0x1d8] sm:$0xff] %vm878_vm3, %v873_v14  ;;  %904 = vst.msk [vmem:[%s1351_s28 + $0xc8] sm:$0xff] %vm878_vm3, %v839_v15  ;;  %v1145_v17 = vpop.f32.mrb[28].mxu0 }
 0x11e   : > { %936 = vst.msk [vmem:[%s1351_s28 + $0x1c8] sm:$0xff] %vm878_vm3, %v871_v16  ;;  %v680_v18 = vadd.f32 %v1145_v17, %v1344_v38  ;;  %v1177_v19 = vpop.f32.mrb[28].mxu1  ;;  %v671_v20 = vpop.f32.mrb[29].mxu0 }
 0x11f   : > { %v808_v21 = vadd.f32 %v1177_v19, %v1344_v38  ;;  %v672_v22 = vadd.f32 %v1344_v38, %v671_v20  ;;  %v799_v23 = vpop.f32.mrb[29].mxu1  ;;  %v1146_v24 = vpop.f32.mrb[30].mxu0 }
 0x120   : > { %v844_v25 = vmax.f32 %v680_v18, 0.0  ;;  %v800_v26 = vadd.f32 %v1344_v38, %v799_v23  ;;  %v683_v27 = vadd.f32 %v1146_v24, %v1344_v38  ;;  %v1178_v28 = vpop.f32.mrb[30].mxu1  ;;  %v674_v29 = vpop.f32.mrb[31].mxu0 }
 0x121   : > { %v876_v30 = vmax.f32 %v808_v21, 0.0  ;;  %v842_v31 = vmax.f32 %v672_v22, 0.0  ;;  %v811_v32 = vadd.f32 %v1178_v28, %v1344_v38  ;;  %v675_v33 = vadd.f32 %v1344_v38, %v674_v29  ;;  %v802_v34 = vpop.f32.mrb[31].mxu1 }
 0x122   : > { %909 = vst.msk [vmem:[%s1351_s28 + $0xf0] sm:$0xff] %vm878_vm3, %v844_v25  ;;  %v874_v35 = vmax.f32 %v800_v26, 0.0  ;;  %v845_v36 = vmax.f32 %v683_v27, 0.0  ;;  %v803_v37 = vadd.f32 %v1344_v38, %v802_v34 }
 0x123   : > { %941 = vst.msk [vmem:[%s1351_s28 + $0x1f0] sm:$0xff] %vm878_vm3, %v876_v30  ;;  %907 = vst.msk [vmem:[%s1351_s28 + $0xe0] sm:$0xff] %vm878_vm3, %v842_v31  ;;  %v877_v39 = vmax.f32 %v811_v32, 0.0  ;;  %v843_v40 = vmax.f32 %v675_v33, 0.0 }
 0x124   : > { %939 = vst.msk [vmem:[%s1351_s28 + $0x1e0] sm:$0xff] %vm878_vm3, %v874_v35  ;;  %910 = vst.msk [vmem:[%s1351_s28 + $0xf8] sm:$0xff] %vm878_vm3, %v845_v36  ;;  %v875_v41 = vmax.f32 %v803_v37, 0.0 }
 0x125   : > { %942 = vst.msk [vmem:[%s1351_s28 + $0x1f8] sm:$0xff] %vm878_vm3, %v877_v39  ;;  %908 = vst.msk [vmem:[%s1351_s28 + $0xe8] sm:$0xff] %vm878_vm3, %v843_v40 }
 0x126   : > { %940 = vst.msk [vmem:[%s1351_s28 + $0x1e8] sm:$0xff] %vm878_vm3, %v875_v41 }
 0x127 PF: > { %s13_s12 = sadd.s32 1, %s1232_s12  }
 0x128   : > { %p10_p4 = scmp.ge.s32.totalorder %s13_s12, 6  }
 0x12a   :  { %12 = sbr.rel (!%p10_p4) target bundleno = 1 (0x1), region = 62 }

</bundles_post_ra>
